<compile_context>
chip_gen: v5e
topology: v5e:2x2
jax: 0.10.0
libtpu: 0.0.40
codegen_flags: <defaults>
</compile_context>

<pallas_src>
import functools

import jax
import jax.numpy as jnp
from jax.experimental import pallas as pl
from jax.experimental.pallas import tpu as pltpu


def _round_up(x: int, m: int) -> int:
    return (x + m - 1) // m * m


def _default_hamming_dtype():
    """int8 Hamming matmul where the MXU has an integer mode (v5*, v6*); bf16 otherwise
    (v7x MXU has no integer path; {0,1} operands are exact in bf16 with f32 accumulation)."""
    try:
        dev = jax.devices()[0]
        if dev.platform == "tpu":
            kind = dev.device_kind.lower()
            if "v5" in kind or "v6" in kind:
                return jnp.int8
    except Exception:
        pass
    return jnp.bfloat16


def binhd_forward_kernel(x_ref, proj_ref, hvt_ref, sumhv_ref, out_ref, dots_acc,
                         *, tD, ones_col, ham_dtype, acc_dtype):
    """One (batch-tile, D-tile) grid step.

    x_ref:    (TB, F)          proj dtype  (resident across the D axis)
    proj_ref: (F, tD)          proj dtype  (streams over D)
    hvt_ref:  (D_pad, C_pad)   int8/bf16   (resident whole call; column `ones_col` is all-ones)
    sumhv_ref:(1, C_pad)       acc dtype   (hoisted per-class popcounts)
    out_ref:  (TB, C_pad)      int32
    dots_acc: (TB, C_pad)      acc dtype scratch
    """
    k = pl.program_id(1)

    @pl.when(k == 0)
    def _():
        dots_acc[...] = jnp.zeros_like(dots_acc)

    # RandomProjectionEncoder.forward_bin on this D-tile: project, binarize to {0,1}.
    projected = jnp.dot(x_ref[...], proj_ref[...],
                        preferred_element_type=jnp.float32)               # (TB, tD) f32
    encoded = (projected >= 0.0).astype(ham_dtype)                        # (TB, tD) in {0,1}

    # Hamming distance via the {0,1} xor identity:
    #   sum_d xor(e, h) = sum_d e + sum_d h - 2 * (e @ h)
    # Column `ones_col` of hvt is all-ones over the valid D rows, so sum_d e is computed by the
    # same matmul (rides in a padding lane of the MXU output for free; no XLU reduction here).
    d0 = pl.multiple_of(k * tD, tD)
    dots_acc[...] += jnp.dot(encoded, hvt_ref[pl.ds(d0, tD), :],
                             preferred_element_type=acc_dtype)            # (TB, C_pad)

    @pl.when(k == pl.num_programs(1) - 1)
    def _():
        senc = dots_acc[:, ones_col:ones_col + 1]     # sum_d encoded: one lane-broadcast / tile
        # Exact while distances stay below 2**24 on the f32 path (D < ~16.7M); int32 path exact.
        out_ref[...] = (senc + sumhv_ref[...] - 2 * dots_acc[...]).astype(jnp.int32)


def prepare_binhd_params(proj, classes_hv, *, block_d=1024,
                         hamming_dtype=None, projection_dtype=jnp.bfloat16):
    """One-time (model-load) padding/packing of the constant weights.

    proj: (F, D) projection matrix; classes_hv: (C, D) in {0, 1}.
    Returns (proj_p, hvt_p, sum_hv) for binhd_forward_padded (use the SAME block_d there).

    NOTE: bf16 projection is exact for integer-valued x/proj; for arbitrary floats, signs where
    |x @ proj| is within a few ulps of 0 may flip vs f32 — pass projection_dtype=jnp.float32 then.
    """
    if hamming_dtype is None:
        hamming_dtype = _default_hamming_dtype()
    acc_dtype = jnp.int32 if jnp.dtype(hamming_dtype) == jnp.dtype(jnp.int8) else jnp.float32

    F, D = proj.shape
    C, D2 = classes_hv.shape
    assert D == D2

    tD = min(block_d, _round_up(D, 128))          # D tile, lane aligned
    D_pad = _round_up(D, tD)
    C_pad = _round_up(C + 1, 128)                 # lane-dense output; +1 spare lane for the
                                                  # all-ones row-sum column

    proj_p = jnp.zeros((F, D_pad), projection_dtype).at[:, :D].set(
        proj.astype(projection_dtype))

    hvf = classes_hv.astype(jnp.float32)
    hvt = jnp.zeros((D_pad, C_pad), jnp.float32)
    hvt = hvt.at[:D, :C].set(hvf.T)
    hvt = hvt.at[:D, C].set(1.0)                  # ones column (valid D rows only, so the padded
                                                  # D rows — where encoded==1 — contribute 0)
    hvt_p = hvt.astype(hamming_dtype)

    # Hoisted per-class popcounts sum_d h.  No padding correction is needed: every hvt row >= D
    # is zero (including the ones column).
    sum_hv = jnp.zeros((1, C_pad), jnp.float32).at[0, :C].set(jnp.sum(hvf, axis=1))
    sum_hv = sum_hv.astype(acc_dtype)
    return proj_p, hvt_p, sum_hv


@functools.partial(jax.jit, static_argnames=("n_classes", "block_b", "block_d"))
def binhd_forward_padded(x, proj_p, hvt_p, sum_hv, *, n_classes,
                         block_b=256, block_d=1024):
    """x: (B, F). proj_p/hvt_p/sum_hv from prepare_binhd_params (same block_d).
    Returns (B, n_classes) int32 Hamming distances."""
    B, F = x.shape
    F2, D_pad = proj_p.shape
    D_pad2, C_pad = hvt_p.shape
    assert F == F2 and D_pad == D_pad2 and sum_hv.shape == (1, C_pad)

    proj_dtype = jnp.dtype(proj_p.dtype)
    ham_dtype = jnp.dtype(hvt_p.dtype)
    acc_dtype = jnp.dtype(sum_hv.dtype)

    # Batch tile: 256 fills the 256-wide MXU M dim on v6e/v7x; int8 path rounds B up to 32 so
    # the i8 sublane tile is full.  (Large-B callers get >= 2 "parallel" tiles for v7x megacore.)
    b_align = 32 if ham_dtype == jnp.dtype(jnp.int8) else 8
    TB = min(block_b, _round_up(B, b_align))
    B_pad = _round_up(B, TB)
    tD = min(block_d, D_pad)
    assert D_pad % tD == 0, "block_d must match the value used in prepare_binhd_params"

    # Only x needs per-call padding; the constant weights were padded once at load time.
    x_p = jnp.zeros((B_pad, F), proj_dtype).at[:B, :].set(x.astype(proj_dtype))

    grid = (B_pad // TB, D_pad // tD)

    def _isz(dt):
        return jnp.dtype(dt).itemsize

    vmem_needed = (2 * TB * F * _isz(proj_dtype)            # x tile (double-buffered, resident)
                   + 2 * F * tD * _isz(proj_dtype)          # proj stream (double-buffered)
                   + 2 * D_pad * C_pad * _isz(ham_dtype)    # resident class matrix
                   + 2 * C_pad * _isz(acc_dtype)            # popcounts
                   + 2 * TB * C_pad * 4                     # int32 output tile
                   + TB * C_pad * _isz(acc_dtype))          # dots scratch
    # Explicit scoped-VMEM budget; capped at 64 MiB so it also respects v7x's physical VMEM.
    vmem_limit = int(min(max(vmem_needed + (4 << 20), 32 << 20), 64 << 20))

    flops = 2 * B_pad * F * D_pad + 2 * B_pad * D_pad * C_pad
    bytes_accessed = (B_pad * F * _isz(proj_dtype)
                      + (B_pad // TB) * F * D_pad * _isz(proj_dtype)   # proj re-read per batch tile
                      + D_pad * C_pad * _isz(ham_dtype)
                      + C_pad * _isz(acc_dtype)
                      + B_pad * C_pad * 4)

    kernel = functools.partial(binhd_forward_kernel, tD=tD, ones_col=n_classes,
                               ham_dtype=ham_dtype, acc_dtype=acc_dtype)

    out = pl.pallas_call(
        kernel,
        out_shape=jax.ShapeDtypeStruct((B_pad, C_pad), jnp.int32),
        grid_spec=pltpu.PrefetchScalarGridSpec(
            num_scalar_prefetch=0,
            grid=grid,
            in_specs=[
                pl.BlockSpec((TB, F), lambda b, k: (b, 0)),         # x: resident over k
                pl.BlockSpec((F, tD), lambda b, k: (0, k)),         # proj: streams over D
                pl.BlockSpec((D_pad, C_pad), lambda b, k: (0, 0)),  # hv^T: resident whole call
                pl.BlockSpec((1, C_pad), lambda b, k: (0, 0)),      # hoisted popcounts
            ],
            out_specs=pl.BlockSpec((TB, C_pad), lambda b, k: (b, 0)),
            scratch_shapes=[
                pltpu.VMEM((TB, C_pad), acc_dtype),                 # dots accumulator
            ],
        ),
        compiler_params=pltpu.CompilerParams(
            dimension_semantics=("parallel", "arbitrary"),
            vmem_limit_bytes=vmem_limit),
        cost_estimate=pl.CostEstimate(flops=flops, transcendentals=0,
                                      bytes_accessed=bytes_accessed),
    )(x_p, proj_p, hvt_p, sum_hv)

    return out[:B, :n_classes]


if __name__ == "__main__":
    key = jax.random.PRNGKey(0)
    # batch, n_features, n_dimensions, n_classes — deliberately not tile-aligned to exercise
    # the B / D / C padding paths.
    B, F, D, C = 10, 32, 300, 5

    k1, k2, k3 = jax.random.split(key, 3)
    # Integer-valued inputs keep every matmul bit-exact across precision paths, so the kernel
    # matches the plain-JAX reference exactly.
    x = jax.random.randint(k1, (B, F), -4, 5).astype(jnp.float32)
    proj = jax.random.randint(k2, (F, D), -3, 4).astype(jnp.float32)    # projection matrix
    # classes_hv is produced by fit() in the original module (clamp of int8 counters to {0,1});
    # synthesize deterministic binary class hypervectors of the same shape/value set.
    classes_hv = jax.random.bernoulli(k3, 0.5, (C, D)).astype(jnp.int8)

    def run(ham_dtype):
        # prepare_* is the one-time model-load step; only x is padded per call.
        proj_p, hvt_p, sum_hv = prepare_binhd_params(proj, classes_hv,
                                                     hamming_dtype=ham_dtype)
        return jax.block_until_ready(
            binhd_forward_padded(x, proj_p, hvt_p, sum_hv, n_classes=C))

    ham = _default_hamming_dtype()
    try:
        out = run(ham)
    except Exception:
        if jnp.dtype(ham) == jnp.dtype(jnp.bfloat16):
            raise
        # Safety net: the bf16 {0,1} Hamming path lowers on every TPU generation.
        out = run(jnp.bfloat16)

    # Plain-JAX reference mirroring the torch loop (bitwise_xor + sum + transpose).
    enc = (x @ proj >= 0).astype(jnp.int32)
    hv = classes_hv.astype(jnp.int32)
    ref = jnp.sum(jnp.bitwise_xor(enc[:, None, :], hv[None, :, :]), axis=-1).astype(jnp.int32)

    assert out.shape == (B, C) and out.dtype == jnp.int32
    assert bool(jnp.all(out == ref)), "mismatch vs reference Hamming distance"
    print("KERNEL_OK")
</pallas_src>

<mosaic_0001>
module attributes {stable_mosaic.version = 11 : i64} {
  func.func @binhd_forward_kernel(%arg0: i32, %arg1: i32, %arg2: memref<16x32xbf16, #tpu.memory_space<vmem>>, %arg3: memref<32x384xbf16, #tpu.memory_space<vmem>>, %arg4: memref<384x128xbf16, #tpu.memory_space<vmem>>, %arg5: memref<1x128xf32, #tpu.memory_space<vmem>>, %arg6: memref<16x128xi32, #tpu.memory_space<vmem>>, %arg7: memref<16x128xf32, #tpu.memory_space<vmem>>) attributes {dimension_semantics = [#tpu.dimension_semantics<parallel>, #tpu.dimension_semantics<arbitrary>], iteration_bounds = array<i64: 1, 1>, scalar_prefetch = 0 : i64, scratch_operands = 1 : i64, tpu.core_type = #tpu.core_type<tc>, window_params = [{transform_indices = @transform_0, window_bounds = array<i64: 16, 32>}, {transform_indices = @transform_1, window_bounds = array<i64: 32, 384>}, {pipeline_mode = #tpu.pipeline_mode<synchronous>, transform_indices = @transform_2, window_bounds = array<i64: 384, 128>}, {pipeline_mode = #tpu.pipeline_mode<synchronous>, transform_indices = @transform_3, window_bounds = array<i64: 1, 128>}, {transform_indices = @transform_4, window_bounds = array<i64: 16, 128>}]} {
    %c0_i32 = arith.constant 0 : i32
    %0 = arith.cmpi eq, %arg1, %c0_i32 : i32
    %1 = arith.extui %0 : i1 to i32
    %c0_i32_0 = arith.constant 0 : i32
    %2 = arith.cmpi ne, %1, %c0_i32_0 : i32
    scf.if %2 {
      %cst_13 = arith.constant 0.000000e+00 : f32
      %22 = vector.broadcast %cst_13 : f32 to vector<16x128xf32>
      %c0_14 = arith.constant 0 : index
      %c0_15 = arith.constant 0 : index
      %23 = vector.load %arg7[%c0_14, %c0_15] : memref<16x128xf32, #tpu.memory_space<vmem>>, vector<16x128xf32>
      tpu.vector_store %arg7[%c0_14, %c0_15], %22 {strides = array<i32>} : memref<16x128xf32, #tpu.memory_space<vmem>>, vector<16x128xf32>,
    } else {
    }
    %c0 = arith.constant 0 : index
    %c0_1 = arith.constant 0 : index
    %3 = vector.load %arg2[%c0, %c0_1] : memref<16x32xbf16, #tpu.memory_space<vmem>>, vector<16x32xbf16>
    %c0_2 = arith.constant 0 : index
    %c0_3 = arith.constant 0 : index
    %4 = vector.load %arg3[%c0_2, %c0_3] : memref<32x384xbf16, #tpu.memory_space<vmem>>, vector<32x384xbf16>
    %cst = arith.constant dense<0.000000e+00> : vector<16x384xf32>
    %5 = tpu.matmul %3, %4, %cst {dimension_numbers = #tpu.dot_dimension_numbers<[1], [0], [0], [1], [0, 0, 1, 1], [], []>} : vector<16x32xbf16>, vector<32x384xbf16>, vector<16x384xf32> -> vector<16x384xf32>
    %cst_4 = arith.constant 0.000000e+00 : f32
    %6 = vector.broadcast %cst_4 : f32 to vector<16x384xf32>
    %7 = arith.cmpf oge, %5, %6 : vector<16x384xf32>
    %8 = arith.extui %7 : vector<16x384xi1> to vector<16x384xi32>
    %9 = arith.sitofp %8 : vector<16x384xi32> to vector<16x384xf32>
    %10 = arith.truncf %9 : vector<16x384xf32> to vector<16x384xbf16>
    %c384_i32 = arith.constant 384 : i32
    %11 = arith.muli %arg1, %c384_i32 : i32
    %12 = tpu.assume_multiple %11, 384 : i32
    %c0_5 = arith.constant 0 : index
    %c0_6 = arith.constant 0 : index
    %13 = vector.load %arg7[%c0_5, %c0_6] : memref<16x128xf32, #tpu.memory_space<vmem>>, vector<16x128xf32>
    %14 = arith.index_cast %12 : i32 to index
    %c0_7 = arith.constant 0 : index
    %15 = vector.load %arg4[%14, %c0_7] : memref<384x128xbf16, #tpu.memory_space<vmem>>, vector<384x128xbf16>
    %cst_8 = arith.constant dense<0.000000e+00> : vector<16x128xf32>
    %16 = tpu.matmul %10, %15, %cst_8 {dimension_numbers = #tpu.dot_dimension_numbers<[1], [0], [0], [1], [0, 0, 1, 1], [], []>} : vector<16x384xbf16>, vector<384x128xbf16>, vector<16x128xf32> -> vector<16x128xf32>
    %17 = arith.addf %13, %16 : vector<16x128xf32>
    %c0_9 = arith.constant 0 : index
    %c0_10 = arith.constant 0 : index
    %18 = vector.load %arg7[%c0_9, %c0_10] : memref<16x128xf32, #tpu.memory_space<vmem>>, vector<16x128xf32>
    tpu.vector_store %arg7[%c0_9, %c0_10], %17 {strides = array<i32>} : memref<16x128xf32, #tpu.memory_space<vmem>>, vector<16x128xf32>,
    %c0_i32_11 = arith.constant 0 : i32
    %19 = arith.cmpi eq, %arg1, %c0_i32_11 : i32
    %20 = arith.extui %19 : i1 to i32
    %c0_i32_12 = arith.constant 0 : i32
    %21 = arith.cmpi ne, %20, %c0_i32_12 : i32
    scf.if %21 {
      %c0_13 = arith.constant 0 : index
      %c5 = arith.constant 5 : index
      %22 = vector.load %arg7[%c0_13, %c5] : memref<16x128xf32, #tpu.memory_space<vmem>>, vector<16x1xf32>
      %c0_14 = arith.constant 0 : index
      %c0_15 = arith.constant 0 : index
      %23 = vector.load %arg5[%c0_14, %c0_15] : memref<1x128xf32, #tpu.memory_space<vmem>>, vector<1x128xf32>
      %24 = vector.broadcast %22 : vector<16x1xf32> to vector<16x128xf32>
      %25 = vector.broadcast %23 : vector<1x128xf32> to vector<16x128xf32>
      %26 = arith.addf %24, %25 : vector<16x128xf32>
      %c0_16 = arith.constant 0 : index
      %c0_17 = arith.constant 0 : index
      %27 = vector.load %arg7[%c0_16, %c0_17] : memref<16x128xf32, #tpu.memory_space<vmem>>, vector<16x128xf32>
      %cst_18 = arith.constant 2.000000e+00 : f32
      %28 = vector.broadcast %cst_18 : f32 to vector<16x128xf32>
      %29 = arith.mulf %28, %27 : vector<16x128xf32>
      %30 = arith.subf %26, %29 : vector<16x128xf32>
      %31 = arith.fptosi %30 : vector<16x128xf32> to vector<16x128xi32>
      %c0_19 = arith.constant 0 : index
      %c0_20 = arith.constant 0 : index
      %32 = vector.load %arg6[%c0_19, %c0_20] : memref<16x128xi32, #tpu.memory_space<vmem>>, vector<16x128xi32>
      tpu.vector_store %arg6[%c0_19, %c0_20], %31 {strides = array<i32>} : memref<16x128xi32, #tpu.memory_space<vmem>>, vector<16x128xi32>,
    } else {
    }
    return
  }
  func.func @transform_0(%arg0: i32, %arg1: i32) -> (i32, i32) {
    %c0_i32 = arith.constant 0 : i32
    %c0_i32_0 = arith.constant 0 : i32
    return %arg0, %c0_i32 : i32, i32
  }
  func.func @transform_1(%arg0: i32, %arg1: i32) -> (i32, i32) {
    %c0_i32 = arith.constant 0 : i32
    %c0_i32_0 = arith.constant 0 : i32
    return %c0_i32, %arg1 : i32, i32
  }
  func.func @transform_2(%arg0: i32, %arg1: i32) -> (i32, i32) {
    %c0_i32 = arith.constant 0 : i32
    %c0_i32_0 = arith.constant 0 : i32
    %c0_i32_1 = arith.constant 0 : i32
    return %c0_i32, %c0_i32_0 : i32, i32
  }
  func.func @transform_3(%arg0: i32, %arg1: i32) -> (i32, i32) {
    %c0_i32 = arith.constant 0 : i32
    %c0_i32_0 = arith.constant 0 : i32
    %c0_i32_1 = arith.constant 0 : i32
    return %c0_i32, %c0_i32_0 : i32, i32
  }
  func.func @transform_4(%arg0: i32, %arg1: i32) -> (i32, i32) {
    %c0_i32 = arith.constant 0 : i32
    %c0_i32_0 = arith.constant 0 : i32
    return %arg0, %c0_i32 : i32, i32
  }
}

</mosaic_0001>

<bundles_post_ra>
// kernel: binhd_forward_padded.1
= control target key start
LH: loop header
LB: loop body
LE: loop exit
PB: predicated region body
PF: predicated region fallthrough
CT: control target
= control target key end

     0   :  { %9 = vsyncpa [#allocation4], 0  ;;  %s748_s0 = inlined_call_operand.vmem [shape: bf16[16,32], index: 0, kind: input, shape index: {}]   ;;  %s749_s1 = inlined_call_operand.hbm [shape: bf16[32,384], index: 1, kind: input, shape index: {}]   ;;  %s750_s2 = inlined_call_operand.hbm [shape: bf16[384,128], index: 2, kind: input, shape index: {}]   ;;  %s751_s3 = inlined_call_operand.vmem [shape: f32[1,128], index: 3, kind: input, shape index: {}]   ;;  %s752_s4 = inlined_call_operand.vmem [shape: s32[16,128], index: 4, kind: output, shape index: {}]  }
   0x1   :  { %s17_s17 = sshll.u32 %s749_s1, 4  ;;  %s18_s17 = int_to_ptr.hbm [resolvable:$true] %s17_s17 }
   0x2   :  { %10 = vsyncpa [#allocation6], 0  ;;  %s694_s18 = smov [#allocation3]   ;;  %s30_s22 = sshll.u32 %s750_s2, 4  ;;  %s31_s22 = int_to_ptr.hbm [resolvable:$true] %s30_s22 }
   0x3   :  { %s19_s19 = sshll.u32 %s694_s18, 4  ;;  %s695_s23 = smov 192   ;;  %s20_s19 = int_to_ptr.vmem [resolvable:$true] %s19_s19 }
   0x4   :  { %s696_s24 = smov 12   ;;  %s697_s25 = smov [#allocation5]  }
   0x5   :  { %25 = dma.hbm_to_vmem [thread:$0]  %s18_s17, 768, %s20_s19, [#allocation4], %s695_s23, %s695_s23, %s696_s24  }
   0x6   :  { %s32_s26 = sshll.u32 %s697_s25, 4  ;;  %s698_s27 = smov 64   ;;  %s33_s26 = int_to_ptr.vmem [resolvable:$true] %s32_s26 }
   0x7   :  { %s699_s28 = smov 4  }
   0x8   :  { %38 = dma.hbm_to_vmem [thread:$0]  %s31_s22, 3072, %s33_s26, [#allocation6], %s698_s27, %s698_s27, %s699_s28  }
   0x9   :  { %690 = dma.done.wait [#allocation4], 768  }
   0xa   :  { %691 = vsyncadd [#allocation4], 4294966528 }
   0xb   :  { %692 = dma.done.wait [#allocation6], 3072  }
   0xc   :  { %693 = vsyncadd [#allocation6], 4294964224  ;;  %v470_v0 = vld [vmem:[#allocation3 + $0x18] sm:$0xf]  ;;  %v596_v1 = vld [vmem:[#allocation3 + $0x20] sm:$0xf0] }
   0xd   :  { %v458_v2 = vld [vmem:[#allocation3] sm:$0xf]  ;;  %v471_v3 = vor.u32 %v596_v1, %v470_v0  ;;  %v593_v4 = vld [vmem:[#allocation3 + $0x8] sm:$0xf0]  ;;  %v595_v5 = vld [vmem:[#allocation3 + $0x1c] sm:$0xf] }
   0xe   :  { %v472_v6 = vld [vmem:[#allocation3 + $0x24] sm:$0xf0]  ;;  %v478_v8 = vld [vmem:[#allocation3 + $0x20] sm:$0xf]  ;;  %v597_v9 = vld [vmem:[#allocation3 + $0x28] sm:$0xf0]  ;;  %v459_v10 = vor.u32 %v593_v4, %v458_v2 }
   0xf   :  { %v475_v7 = vor.u32 %v595_v5, %v472_v6  ;;  %113 = vmatpush.bf16.msra.mxu2 %v471_v3  ;;  %v592_v11 = vld [vmem:[#allocation3 + $0x4] sm:$0xf]  ;;  %v460_v12 = vld [vmem:[#allocation3 + $0xc] sm:$0xf0]  ;;  %v479_v13 = vor.u32 %v597_v9, %v478_v8  ;;  %v613_v15 = vld [vmem:[#allocation5 + $0x78] sm:$0xff]  ;;  %vm103_vm0 = vcmask 261120  }
  0x10   :  { %v463_v14 = vor.u32 %v592_v11, %v460_v12  ;;  %v605_v16 = vld [vmem:[#allocation5 + $0x38] sm:$0xff]  ;;  %v594_v18 = vld [vmem:[#allocation3 + $0x10] sm:$0xf0]  ;;  %v591_v19 = vld [vmem:[%s748_s0] sm:$0xff]  ;;  %383 = vmatpush.bf16.msra.mxu0 %v613_v15  ;;  %v700_v46 = vmov 1.0|1.0  }
  0x11   :  { %127 = vmatpush.bf16.msra.mxu1 %v475_v7  ;;  %v466_v17 = vld [vmem:[#allocation3 + $0x8] sm:$0xf]  ;;  %369 = vmatpush.bf16.msra.mxu3 %v605_v16  ;;  %v612_v20 = vld [vmem:[#allocation5 + $0x70] sm:$0xff]  ;;  %v611_v24 = vld [vmem:[#allocation5 + $0x68] sm:$0xff]  ;;  %v701_v50 = vmov 5  }
  0x12   :  { %v604_v21 = vld [vmem:[#allocation5 + $0x30] sm:$0xff]  ;;  %v621_v22 = vld [vmem:[#allocation5 + $0xb8] sm:$0xff]  ;;  %v467_v23 = vor.u32 %v594_v18, %v466_v17  ;;  %v603_v25 = vld [vmem:[#allocation5 + $0x28] sm:$0xff]  ;;  %640 = vset.pattern.permute.xlu0 %v701_v50 }
  0x13   :  { %114 = vmatpush.bf16.msra.mxu2 %v459_v10  ;;  %v610_v26 = vld [vmem:[#allocation5 + $0x60] sm:$0xff]  ;;  %v609_v28 = vld [vmem:[#allocation5 + $0x58] sm:$0xff]  ;;  %v608_v30 = vld [vmem:[#allocation5 + $0x50] sm:$0xff] }
  0x14   :  { %384 = vmatpush.bf16.msra.mxu0 %v612_v20  ;;  %v602_v27 = vld [vmem:[#allocation5 + $0x20] sm:$0xff]  ;;  %v601_v29 = vld [vmem:[#allocation5 + $0x18] sm:$0xff]  ;;  %v600_v31 = vld [vmem:[#allocation5 + $0x10] sm:$0xff] }
  0x15   :  { %128 = vmatpush.bf16.msra.mxu1 %v463_v14  ;;  %370 = vmatpush.bf16.msra.mxu3 %v604_v21  ;;  %v620_v32 = vld [vmem:[#allocation5 + $0xb0] sm:$0xff]  ;;  %v607_v33 = vld [vmem:[#allocation5 + $0x48] sm:$0xff]  ;;  %v606_v36 = vld [vmem:[#allocation5 + $0x40] sm:$0xff] }
  0x16   :  { %480 = vmatmul.msk.bf16.vlgmr.msra.gmra.mxu2 %vm103_vm0, %v591_v19  ;;  %v599_v34 = vld [vmem:[#allocation5 + $0x8] sm:$0xff]  ;;  %v598_v37 = vld [vmem:[#allocation5] sm:$0xff]  ;;  %v617_v39 = vld [vmem:[#allocation5 + $0x98] sm:$0xff] }
  0x17   :  { %141 = vmatpush.bf16.msrb.mxu2 %v479_v13  ;;  %v619_v35 = vld [vmem:[#allocation5 + $0xa8] sm:$0xff]  ;;  %v618_v38 = vld [vmem:[#allocation5 + $0xa0] sm:$0xff]  ;;  %v616_v40 = vld [vmem:[#allocation5 + $0x90] sm:$0xff] }
  0x18   :  { %481 = vmatmul.msk.bf16.vlgmr.msra.gmra.mxu1 %vm103_vm0, %v591_v19  ;;  %385 = vmatpush.bf16.msra.mxu0 %v611_v24  ;;  %v615_v41 = vld [vmem:[#allocation5 + $0x88] sm:$0xff]  ;;  %v614_v42 = vld [vmem:[#allocation5 + $0x80] sm:$0xff]  ;;  %v641_v61 = vld [vmem:[%s751_s3] ss:$0 sm:$0xff] }
  0x19   :  { %397 = vmatpush.bf16.msrb.mxu1 %v621_v22  ;;  %371 = vmatpush.bf16.msra.mxu3 %v603_v25 }
  0x1b   :  { %142 = vmatpush.bf16.msrb.mxu2 %v467_v23 }
  0x1c   :  { %386 = vmatpush.bf16.msra.mxu0 %v610_v26 }
  0x1d   :  { %372 = vmatpush.bf16.msra.mxu3 %v602_v27  ;;  %398 = vmatpush.bf16.msrb.mxu1 %v620_v32 }
  0x20   :  { %387 = vmatpush.bf16.msra.mxu0 %v609_v28 }
  0x21   :  { %373 = vmatpush.bf16.msra.mxu3 %v601_v29  ;;  %399 = vmatpush.bf16.msrb.mxu1 %v619_v35 }
  0x24   :  { %388 = vmatpush.bf16.msra.mxu0 %v608_v30 }
  0x25   :  { %374 = vmatpush.bf16.msra.mxu3 %v600_v31  ;;  %400 = vmatpush.bf16.msrb.mxu1 %v618_v38 }
  0x26   :  { %482 = vmatmul.msk.bf16.vlgmr.msrb.gmra.mxu2 %vm103_vm0, %v591_v19 }
  0x28   :  { %389 = vmatpush.bf16.msra.mxu0 %v607_v33 }
  0x29   :  { %375 = vmatpush.bf16.msra.mxu3 %v599_v34  ;;  %401 = vmatpush.bf16.msrb.mxu1 %v617_v39 }
  0x2c   :  { %390 = vmatpush.bf16.msra.mxu0 %v606_v36 }
  0x2d   :  { %376 = vmatpush.bf16.msra.mxu3 %v598_v37  ;;  %402 = vmatpush.bf16.msrb.mxu1 %v616_v40 }
  0x31   :  { %403 = vmatpush.bf16.msrb.mxu1 %v615_v41 }
  0x35   :  { %404 = vmatpush.bf16.msrb.mxu1 %v614_v42 }
  0x95   :  { %v130_v43 = vpop.f32.mrf.mxu1 }
  0x96   :  { %vm150_vm1 = vcmp.ge.f32.partialorder %v130_v43, 0.0 }
  0x99   :  { %v116_v44 = vpop.f32.mrf.mxu2 }
  0x9a   :  { %vm149_vm4 = vcmp.ge.f32.partialorder %v116_v44, 0.0 }
  0x9d   :  { %v132_v45 = vpop.f32.mrf.mxu1 }
  0x9e   :  { %vm153_vm2 = vcmp.ge.f32.partialorder %v132_v45, 0.0 }
  0x9f   :  { %vm587_vm3 = vmpackc.low %vm153_vm2, %vm150_vm1 }
  0xa0   :  { %588 = vmatmul.msk.bf16.vlgmr.msra.gmra.mxu0 %vm587_vm3, %v700_v46 }
  0xa1   :  { %v118_v47 = vpop.f32.mrf.mxu2 }
  0xa2   :  { %vm152_vm5 = vcmp.ge.f32.partialorder %v118_v47, 0.0 }
  0xa3   :  { %vm585_vm6 = vmpackc.low %vm152_vm5, %vm149_vm4 }
  0xa4   :  { %586 = vmatmul.msk.bf16.vlgmr.msra.gmra.mxu3 %vm585_vm6, %v700_v46 }
  0xa9   :  { %v144_v48 = vpop.f32.mrf.mxu2 }
  0xaa   :  { %vm151_vm7 = vcmp.ge.f32.partialorder %v144_v48, 0.0 }
  0xb1   :  { %v146_v49 = vpop.f32.mrf.mxu2 }
  0xb2   :  { %vm154_vm8 = vcmp.ge.f32.partialorder %v146_v49, 0.0 }
  0xb3   :  { %vm589_vm9 = vmpackc.low %vm154_vm8, %vm151_vm7 }
  0xb4   :  { %590 = vmatmul.msk.bf16.vlgmr.msrb.gmra.mxu1 %vm589_vm9, %v700_v46 }
 0x11d   :  { %v392_v52 = vpop.f32.mrf.mxu0 }
 0x125   :  { %v394_v57 = vpop.f32.mrf.mxu0 }
 0x127   :  { %v378_v51 = vpop.f32.mrf.mxu3 }
 0x128   :  { %v393_v53 = vadd.f32 %v392_v52, %v378_v51 }
 0x12f   :  { %v380_v56 = vpop.f32.mrf.mxu3 }
 0x130   :  { %v395_v58 = vadd.f32 %v394_v57, %v380_v56 }
 0x131   :  { %v406_v54 = vpop.f32.mrf.mxu1 }
 0x132   :  { %v407_v55 = vadd.f32 %v406_v54, %v393_v53 }
 0x134   :  { %423 = vperm.xlu0 %640, %v407_v55   ;;  %v436_v63 = vmul.f32 2.0, %v407_v55 }
 0x139   :  { %v408_v59 = vpop.f32.mrf.mxu1 }
 0x13a   :  { %v409_v60 = vadd.f32 %v408_v59, %v395_v58 }
 0x13c   :  { %428 = vperm.xlu0 %640, %v409_v60   ;;  %v437_v7 = vmul.f32 2.0, %v409_v60 }
 0x1a6   :  { %v424_v62 = vpop.permute.xlu0 %423 }
 0x1a7   :  { %v434_v0 = vadd.f32 %v641_v61, %v424_v62 }
 0x1a9   :  { %v438_v1 = vsub.f32 %v434_v0, %v436_v63 }
 0x1ab   :  { %vm622_vm10 = vcmp.lt.s32.totalorder %v438_v1, 0  ;;  %v623_v2 = vceil.f32 %v438_v1  ;;  %v624_v3 = vfloor.f32 %v438_v1 }
 0x1ad   :  { %v625_v4 = vsel %vm622_vm10, %v623_v2, %v624_v3 }
 0x1ae   :  { %v626_v5 = vcvt.f32.s32 %v625_v4  ;;  %v429_v6 = vpop.permute.xlu0 %428 }
 0x1af   :  { %v435_v8 = vadd.f32 %v641_v61, %v429_v6 }
 0x1b0   :  { %442 = vst [vmem:[%s752_s4] sm:$0xff] %v626_v5 }
 0x1b1   :  { %v439_v9 = vsub.f32 %v435_v8, %v437_v7 }
 0x1b3   :  { %vm627_vm11 = vcmp.lt.s32.totalorder %v439_v9, 0  ;;  %v628_v10 = vceil.f32 %v439_v9  ;;  %v629_v11 = vfloor.f32 %v439_v9 }
 0x1b5   :  { %v630_v12 = vsel %vm627_vm11, %v628_v10, %v629_v11 }
 0x1b6   :  { %v631_v13 = vcvt.f32.s32 %v630_v12 }
 0x1b8   :  { %443 = vst [vmem:[%s752_s4 + $0x8] sm:$0xff] %v631_v13 }
 0x1b9   :  { %448 = vsyncpa [#allocation4], 1 }
 0x1ba   :  { %449 = vsyncpa [#allocation6], 1 }

</bundles_post_ra>
